<compile_context>
chip_gen: v6e
topology: v6e:2x2x1
jax: 0.10.0
libtpu: 0.0.40
codegen_flags: <defaults>
</compile_context>

<pallas_src>
import math
import jax
import jax.numpy as jnp
from jax.experimental import pallas as pl
from jax.experimental.pallas import tpu as pltpu


def _round_up(x, m):
    return ((x + m - 1) // m) * m


def _pick_tile(dim_p, target):
    """Largest 128-multiple that divides dim_p (a 128-multiple) and is <= target."""
    target = max(int(target), 128)
    units = dim_p // 128
    best = 1
    for d in range(1, units + 1):
        if units % d == 0 and d * 128 <= target:
            best = d
    return best * 128


# --------------------------------------------------------------------------
# Kernels
# --------------------------------------------------------------------------
def _noisy_train_kernel(x_ref, wm_ref, wv_ref, eps_in_ref, eps_out_ref, b_ref,
                        o_ref, acc_m_ref, acc_n_ref):
    """One (out-tile j, k-tile) step of y = x@Wm + eps_out*((x*eps_in)@Wv) + b."""
    k = pl.program_id(1)

    @pl.when(k == 0)
    def _init():
        acc_m_ref[...] = jnp.zeros_like(acc_m_ref)
        acc_n_ref[...] = jnp.zeros_like(acc_n_ref)

    x = x_ref[...]
    # Fold eps_in into the activations (only B*tk VPU ops per step).
    xn = x * eps_in_ref[...]
    # Upcast bf16 weight tiles in-register; f32 MXU accumulation.
    wm = wm_ref[...].astype(jnp.float32)
    wv = wv_ref[...].astype(jnp.float32)
    acc_m_ref[...] += jnp.dot(x, wm, preferred_element_type=jnp.float32)
    acc_n_ref[...] += jnp.dot(xn, wv, preferred_element_type=jnp.float32)

    @pl.when(k == pl.num_programs(1) - 1)
    def _finalize():
        # Fold eps_out into the noise-matmul output once per output tile and
        # add the pre-fused noisy bias.
        y = acc_m_ref[...] + eps_out_ref[...] * acc_n_ref[...] + b_ref[...]
        o_ref[...] = y.astype(o_ref.dtype)


def _plain_linear_kernel(x_ref, wm_ref, b_ref, o_ref, acc_ref):
    """Eval-mode path: y = x@Wm + b (no Wv stream, no second matmul)."""
    k = pl.program_id(1)

    @pl.when(k == 0)
    def _init():
        acc_ref[...] = jnp.zeros_like(acc_ref)

    acc_ref[...] += jnp.dot(x_ref[...], wm_ref[...].astype(jnp.float32),
                            preferred_element_type=jnp.float32)

    @pl.when(k == pl.num_programs(1) - 1)
    def _finalize():
        o_ref[...] = (acc_ref[...] + b_ref[...]).astype(o_ref.dtype)


# --------------------------------------------------------------------------
# Wrappers
# --------------------------------------------------------------------------
def prepare_noisy_linear_weights(weight_mean, weight_var, *,
                                 weight_dtype=jnp.bfloat16):
    """One-time transform of the (out_dim,in_dim) parameters for the kernel.

    Transposes to (in_dim,out_dim), zero-pads K/N to 128-multiples, and casts
    to `weight_dtype` (bf16 by default: halves the HBM weight stream while the
    kernel keeps f32 accumulation). Call this once at init / after an
    optimizer update, NOT per forward.
    """
    out_dim, in_dim = weight_mean.shape
    Kp = _round_up(in_dim, 128)
    Np = _round_up(out_dim, 128)

    def prep(w):
        wt = w.T.astype(weight_dtype)
        return jnp.pad(wt, ((0, Kp - in_dim), (0, Np - out_dim)))

    return prep(weight_mean), prep(weight_var)


def noisy_linear_forward(x, wm_prep, wv_prep, bias_mean, bias_var,
                         eps_in, eps_out, eps_bias, *, training=True,
                         tn_target=256, tk_target=512):
    """NoisyLinear forward via a tiled Pallas kernel.

    wm_prep/wv_prep come from prepare_noisy_linear_weights (pre-transposed,
    pre-padded, bf16). training=False dispatches a plain-linear kernel that
    never touches wv_prep.
    """
    B, in_dim = x.shape
    out_dim = bias_mean.shape[0]
    Kp, Np = wm_prep.shape

    # Tile sizes: 128-aligned divisors of the padded dims (no over-padding).
    tk = _pick_tile(Kp, tk_target)
    tn = _pick_tile(Np, tn_target)
    # v7x megacore: ensure >=2 tiles on the parallel j axis when out_dim allows,
    # so the second TensorCore gets work.
    if Np // tn < 2 and Np >= 256:
        tn = _pick_tile(Np, Np // 2)

    # Per-forward padding of the small operands only.
    x_p = jnp.pad(x, ((0, 0), (0, Kp - in_dim)))
    if training:
        bias = bias_mean + bias_var * eps_bias   # fuse noisy bias once
    else:
        bias = bias_mean
    bias_p = jnp.pad(bias.reshape(1, out_dim), ((0, 0), (0, Np - out_dim)))

    grid = (Np // tn, Kp // tk)  # (parallel out_dim axis, reduction K axis last)
    # TODO(synk): for large B, add a batch grid axis (or keep x/eps_in resident
    # with a full-K block) so x isn't re-streamed once per out-tile sweep; at
    # B=8 that traffic is negligible.
    # TODO(synk): on v7x, larger weight tiles + pl.Buffered(3) on the weight
    # specs (and optionally fp8 weights with per-channel scales) are further
    # HBM-side wins; kept at portable defaults here.

    if training:
        eps_in_p = jnp.pad(eps_in.reshape(1, in_dim), ((0, 0), (0, Kp - in_dim)))
        eps_out_p = jnp.pad(eps_out.reshape(1, out_dim), ((0, 0), (0, Np - out_dim)))
        out_p = pl.pallas_call(
            _noisy_train_kernel,
            out_shape=jax.ShapeDtypeStruct((B, Np), x.dtype),
            grid_spec=pltpu.PrefetchScalarGridSpec(
                num_scalar_prefetch=0,
                grid=grid,
                in_specs=[
                    pl.BlockSpec((B, tk), lambda j, k: (0, k)),    # x
                    pl.BlockSpec((tk, tn), lambda j, k: (k, j)),   # Wm^T (bf16)
                    pl.BlockSpec((tk, tn), lambda j, k: (k, j)),   # Wv^T (bf16)
                    pl.BlockSpec((1, tk), lambda j, k: (0, k)),    # eps_in
                    pl.BlockSpec((1, tn), lambda j, k: (0, j)),    # eps_out
                    pl.BlockSpec((1, tn), lambda j, k: (0, j)),    # fused noisy bias
                ],
                out_specs=pl.BlockSpec((B, tn), lambda j, k: (0, j)),
                scratch_shapes=[pltpu.VMEM((B, tn), jnp.float32),   # mean acc
                                pltpu.VMEM((B, tn), jnp.float32)],  # noise acc
            ),
            compiler_params=pltpu.CompilerParams(
                dimension_semantics=("parallel", "arbitrary")),
        )(x_p, wm_prep, wv_prep, eps_in_p, eps_out_p, bias_p)
    else:
        out_p = pl.pallas_call(
            _plain_linear_kernel,
            out_shape=jax.ShapeDtypeStruct((B, Np), x.dtype),
            grid_spec=pltpu.PrefetchScalarGridSpec(
                num_scalar_prefetch=0,
                grid=grid,
                in_specs=[
                    pl.BlockSpec((B, tk), lambda j, k: (0, k)),    # x
                    pl.BlockSpec((tk, tn), lambda j, k: (k, j)),   # Wm^T (bf16)
                    pl.BlockSpec((1, tn), lambda j, k: (0, j)),    # bias
                ],
                out_specs=pl.BlockSpec((B, tn), lambda j, k: (0, j)),
                scratch_shapes=[pltpu.VMEM((B, tn), jnp.float32)],
            ),
            compiler_params=pltpu.CompilerParams(
                dimension_semantics=("parallel", "arbitrary")),
        )(x_p, wm_prep, bias_p)

    return out_p[:, :out_dim]


# --------------------------------------------------------------------------
# Parameter / noise helpers (replicate the PyTorch module)
# --------------------------------------------------------------------------
def scale_noise(key, size):
    """sign(g) * sqrt(|g|) for g ~ N(0,1)  (PyTorch _scale_noise)."""
    g = jax.random.normal(key, (size,), dtype=jnp.float32)
    return jnp.sign(g) * jnp.sqrt(jnp.abs(g))


def init_noisy_linear_params(key, in_dim, out_dim, std_init=0.4):
    """Deterministic replica of NoisyLinear.reset_parameters()."""
    k_wm, k_bm = jax.random.split(key)
    mu_range = 1.0 / math.sqrt(in_dim)
    weight_mean = jax.random.uniform(k_wm, (out_dim, in_dim), jnp.float32,
                                     minval=-mu_range, maxval=mu_range)
    weight_var = jnp.full((out_dim, in_dim), std_init / math.sqrt(in_dim),
                          dtype=jnp.float32)
    bias_mean = jax.random.uniform(k_bm, (out_dim,), jnp.float32,
                                   minval=-mu_range, maxval=mu_range)
    bias_var = jnp.full((out_dim,), std_init / math.sqrt(out_dim),
                        dtype=jnp.float32)
    return weight_mean, weight_var, bias_mean, bias_var


def _reference(x, wm, wv, bm, bv, eps_in, eps_out, eps_b, *, training,
               weight_dtype=jnp.bfloat16):
    """Pure-JAX reference using the same (bf16-rounded) stored weights."""
    wm = wm.astype(weight_dtype).astype(jnp.float32)
    wv = wv.astype(weight_dtype).astype(jnp.float32)
    if training:
        w = wm + wv * (eps_out[:, None] * eps_in[None, :])
        b = bm + bv * eps_b
    else:
        w, b = wm, bm
    return jnp.dot(x, w.T, precision=jax.lax.Precision.HIGHEST) + b


def _run_case(key, B, in_dim, out_dim, training):
    k_param, k_x, k_in, k_out, k_b = jax.random.split(key, 5)
    wm, wv, bm, bv = init_noisy_linear_params(k_param, in_dim, out_dim, 0.4)
    x = jax.random.normal(k_x, (B, in_dim), dtype=jnp.float32)
    # reset_noise() happens every forward; generate it deterministically here.
    eps_in = scale_noise(k_in, in_dim)
    eps_out = scale_noise(k_out, out_dim)
    eps_b = scale_noise(k_b, out_dim)

    # One-time weight preparation (transpose + pad + bf16) outside the forward.
    wm_prep, wv_prep = prepare_noisy_linear_weights(wm, wv)

    y = noisy_linear_forward(x, wm_prep, wv_prep, bm, bv,
                             eps_in, eps_out, eps_b, training=training)
    y = jax.block_until_ready(y)

    y_ref = _reference(x, wm, wv, bm, bv, eps_in, eps_out, eps_b,
                       training=training)
    assert y.shape == (B, out_dim)
    assert jnp.allclose(y, y_ref, atol=3e-4, rtol=3e-4), (
        f"mismatch for B={B}, in={in_dim}, out={out_dim}, training={training}: "
        f"max abs err {jnp.max(jnp.abs(y - y_ref))}")


if __name__ == "__main__":
    key = jax.random.PRNGKey(0)
    k1, k2, k3, k4 = jax.random.split(key, 4)

    # Small DQN-head-like shape (single grid step after padding to 128).
    _run_case(k1, B=8, in_dim=32, out_dim=32, training=True)
    # Non-aligned multi-tile shape: pads only to 640x384 (no tile over-padding),
    # exercises the 3x5 grid + K reduction + divisor tile selection.
    _run_case(k2, B=8, in_dim=640, out_dim=384, training=True)
    # Tile-aligned shape where the v7x >=2-parallel-tile rule kicks in (tn=128).
    _run_case(k3, B=8, in_dim=256, out_dim=256, training=True)
    # Eval-mode path: plain-linear kernel, weight_var never streamed.
    _run_case(k4, B=8, in_dim=32, out_dim=32, training=False)

    print("KERNEL_OK")
</pallas_src>

<mosaic_0001>
module attributes {stable_mosaic.version = 11 : i64} {
  func.func @_noisy_train_kernel(%arg0: i32, %arg1: i32, %arg2: memref<8x128xf32, #tpu.memory_space<vmem>>, %arg3: memref<128x128xbf16, #tpu.memory_space<vmem>>, %arg4: memref<128x128xbf16, #tpu.memory_space<vmem>>, %arg5: memref<1x128xf32, #tpu.memory_space<vmem>>, %arg6: memref<1x128xf32, #tpu.memory_space<vmem>>, %arg7: memref<1x128xf32, #tpu.memory_space<vmem>>, %arg8: memref<8x128xf32, #tpu.memory_space<vmem>>, %arg9: memref<8x128xf32, #tpu.memory_space<vmem>>, %arg10: memref<8x128xf32, #tpu.memory_space<vmem>>) attributes {dimension_semantics = [#tpu.dimension_semantics<parallel>, #tpu.dimension_semantics<arbitrary>], iteration_bounds = array<i64: 1, 1>, scalar_prefetch = 0 : i64, scratch_operands = 2 : i64, tpu.core_type = #tpu.core_type<tc>, window_params = [{transform_indices = @transform_0, window_bounds = array<i64: 8, 128>}, {transform_indices = @transform_1, window_bounds = array<i64: 128, 128>}, {transform_indices = @transform_2, window_bounds = array<i64: 128, 128>}, {transform_indices = @transform_3, window_bounds = array<i64: 1, 128>}, {transform_indices = @transform_4, window_bounds = array<i64: 1, 128>}, {transform_indices = @transform_5, window_bounds = array<i64: 1, 128>}, {transform_indices = @transform_6, window_bounds = array<i64: 8, 128>}]} {
    %c0_i32 = arith.constant 0 : i32
    %0 = arith.cmpi eq, %arg1, %c0_i32 : i32
    %1 = arith.extui %0 : i1 to i32
    %c0_i32_0 = arith.constant 0 : i32
    %2 = arith.cmpi ne, %1, %c0_i32_0 : i32
    scf.if %2 {
      %cst_19 = arith.constant 0.000000e+00 : f32
      %22 = vector.broadcast %cst_19 : f32 to vector<8x128xf32>
      %c0_20 = arith.constant 0 : index
      %c0_21 = arith.constant 0 : index
      %23 = vector.load %arg9[%c0_20, %c0_21] : memref<8x128xf32, #tpu.memory_space<vmem>>, vector<8x128xf32>
      tpu.vector_store %arg9[%c0_20, %c0_21], %22 {strides = array<i32>} : memref<8x128xf32, #tpu.memory_space<vmem>>, vector<8x128xf32>,
      %cst_22 = arith.constant 0.000000e+00 : f32
      %24 = vector.broadcast %cst_22 : f32 to vector<8x128xf32>
      %c0_23 = arith.constant 0 : index
      %c0_24 = arith.constant 0 : index
      %25 = vector.load %arg10[%c0_23, %c0_24] : memref<8x128xf32, #tpu.memory_space<vmem>>, vector<8x128xf32>
      tpu.vector_store %arg10[%c0_23, %c0_24], %24 {strides = array<i32>} : memref<8x128xf32, #tpu.memory_space<vmem>>, vector<8x128xf32>,
    } else {
    }
    %c0 = arith.constant 0 : index
    %c0_1 = arith.constant 0 : index
    %3 = vector.load %arg2[%c0, %c0_1] : memref<8x128xf32, #tpu.memory_space<vmem>>, vector<8x128xf32>
    %c0_2 = arith.constant 0 : index
    %c0_3 = arith.constant 0 : index
    %4 = vector.load %arg5[%c0_2, %c0_3] : memref<1x128xf32, #tpu.memory_space<vmem>>, vector<1x128xf32>
    %5 = vector.broadcast %4 : vector<1x128xf32> to vector<8x128xf32>
    %6 = arith.mulf %3, %5 : vector<8x128xf32>
    %c0_4 = arith.constant 0 : index
    %c0_5 = arith.constant 0 : index
    %7 = vector.load %arg3[%c0_4, %c0_5] : memref<128x128xbf16, #tpu.memory_space<vmem>>, vector<128x128xbf16>
    %8 = arith.extf %7 : vector<128x128xbf16> to vector<128x128xf32>
    %c0_6 = arith.constant 0 : index
    %c0_7 = arith.constant 0 : index
    %9 = vector.load %arg4[%c0_6, %c0_7] : memref<128x128xbf16, #tpu.memory_space<vmem>>, vector<128x128xbf16>
    %10 = arith.extf %9 : vector<128x128xbf16> to vector<128x128xf32>
    %c0_8 = arith.constant 0 : index
    %c0_9 = arith.constant 0 : index
    %11 = vector.load %arg9[%c0_8, %c0_9] : memref<8x128xf32, #tpu.memory_space<vmem>>, vector<8x128xf32>
    %cst = arith.constant dense<0.000000e+00> : vector<8x128xf32>
    %12 = tpu.matmul %3, %8, %cst {dimension_numbers = #tpu.dot_dimension_numbers<[1], [0], [0], [1], [0, 0, 1, 1], [], []>} : vector<8x128xf32>, vector<128x128xf32>, vector<8x128xf32> -> vector<8x128xf32>
    %13 = arith.addf %11, %12 : vector<8x128xf32>
    %c0_10 = arith.constant 0 : index
    %c0_11 = arith.constant 0 : index
    %14 = vector.load %arg9[%c0_10, %c0_11] : memref<8x128xf32, #tpu.memory_space<vmem>>, vector<8x128xf32>
    tpu.vector_store %arg9[%c0_10, %c0_11], %13 {strides = array<i32>} : memref<8x128xf32, #tpu.memory_space<vmem>>, vector<8x128xf32>,
    %c0_12 = arith.constant 0 : index
    %c0_13 = arith.constant 0 : index
    %15 = vector.load %arg10[%c0_12, %c0_13] : memref<8x128xf32, #tpu.memory_space<vmem>>, vector<8x128xf32>
    %cst_14 = arith.constant dense<0.000000e+00> : vector<8x128xf32>
    %16 = tpu.matmul %6, %10, %cst_14 {dimension_numbers = #tpu.dot_dimension_numbers<[1], [0], [0], [1], [0, 0, 1, 1], [], []>} : vector<8x128xf32>, vector<128x128xf32>, vector<8x128xf32> -> vector<8x128xf32>
    %17 = arith.addf %15, %16 : vector<8x128xf32>
    %c0_15 = arith.constant 0 : index
    %c0_16 = arith.constant 0 : index
    %18 = vector.load %arg10[%c0_15, %c0_16] : memref<8x128xf32, #tpu.memory_space<vmem>>, vector<8x128xf32>
    tpu.vector_store %arg10[%c0_15, %c0_16], %17 {strides = array<i32>} : memref<8x128xf32, #tpu.memory_space<vmem>>, vector<8x128xf32>,
    %c0_i32_17 = arith.constant 0 : i32
    %19 = arith.cmpi eq, %arg1, %c0_i32_17 : i32
    %20 = arith.extui %19 : i1 to i32
    %c0_i32_18 = arith.constant 0 : i32
    %21 = arith.cmpi ne, %20, %c0_i32_18 : i32
    scf.if %21 {
      %c0_19 = arith.constant 0 : index
      %c0_20 = arith.constant 0 : index
      %22 = vector.load %arg9[%c0_19, %c0_20] : memref<8x128xf32, #tpu.memory_space<vmem>>, vector<8x128xf32>
      %c0_21 = arith.constant 0 : index
      %c0_22 = arith.constant 0 : index
      %23 = vector.load %arg6[%c0_21, %c0_22] : memref<1x128xf32, #tpu.memory_space<vmem>>, vector<1x128xf32>
      %c0_23 = arith.constant 0 : index
      %c0_24 = arith.constant 0 : index
      %24 = vector.load %arg10[%c0_23, %c0_24] : memref<8x128xf32, #tpu.memory_space<vmem>>, vector<8x128xf32>
      %25 = vector.broadcast %23 : vector<1x128xf32> to vector<8x128xf32>
      %26 = arith.mulf %25, %24 : vector<8x128xf32>
      %27 = arith.addf %22, %26 : vector<8x128xf32>
      %c0_25 = arith.constant 0 : index
      %c0_26 = arith.constant 0 : index
      %28 = vector.load %arg7[%c0_25, %c0_26] : memref<1x128xf32, #tpu.memory_space<vmem>>, vector<1x128xf32>
      %29 = vector.broadcast %28 : vector<1x128xf32> to vector<8x128xf32>
      %30 = arith.addf %27, %29 : vector<8x128xf32>
      %c0_27 = arith.constant 0 : index
      %c0_28 = arith.constant 0 : index
      %31 = vector.load %arg8[%c0_27, %c0_28] : memref<8x128xf32, #tpu.memory_space<vmem>>, vector<8x128xf32>
      tpu.vector_store %arg8[%c0_27, %c0_28], %30 {strides = array<i32>} : memref<8x128xf32, #tpu.memory_space<vmem>>, vector<8x128xf32>,
    } else {
    }
    return
  }
  func.func @transform_0(%arg0: i32, %arg1: i32) -> (i32, i32) {
    %c0_i32 = arith.constant 0 : i32
    %c0_i32_0 = arith.constant 0 : i32
    return %c0_i32, %arg1 : i32, i32
  }
  func.func @transform_1(%arg0: i32, %arg1: i32) -> (i32, i32) {
    %c0_i32 = arith.constant 0 : i32
    return %arg1, %arg0 : i32, i32
  }
  func.func @transform_2(%arg0: i32, %arg1: i32) -> (i32, i32) {
    %c0_i32 = arith.constant 0 : i32
    return %arg1, %arg0 : i32, i32
  }
  func.func @transform_3(%arg0: i32, %arg1: i32) -> (i32, i32) {
    %c0_i32 = arith.constant 0 : i32
    %c0_i32_0 = arith.constant 0 : i32
    return %c0_i32, %arg1 : i32, i32
  }
  func.func @transform_4(%arg0: i32, %arg1: i32) -> (i32, i32) {
    %c0_i32 = arith.constant 0 : i32
    %c0_i32_0 = arith.constant 0 : i32
    return %c0_i32, %arg0 : i32, i32
  }
  func.func @transform_5(%arg0: i32, %arg1: i32) -> (i32, i32) {
    %c0_i32 = arith.constant 0 : i32
    %c0_i32_0 = arith.constant 0 : i32
    return %c0_i32, %arg0 : i32, i32
  }
  func.func @transform_6(%arg0: i32, %arg1: i32) -> (i32, i32) {
    %c0_i32 = arith.constant 0 : i32
    %c0_i32_0 = arith.constant 0 : i32
    return %c0_i32, %arg0 : i32, i32
  }
}

</mosaic_0001>

<bundles_post_ra>
// kernel: tpu_custom_call.1
= control target key start
LH: loop header
LB: loop body
LE: loop exit
PB: predicated region body
PF: predicated region fallthrough
CT: control target
= control target key end

     0   :  { %11 = vsyncpa [#allocation5], 0  ;;  %s704_s0 = inlined_call_operand.hbm [shape: f32[8,128], index: 0, kind: input, shape index: {}]   ;;  %s705_s1 = inlined_call_operand.hbm [shape: bf16[128,128], index: 1, kind: input, shape index: {}]   ;;  %s706_s2 = inlined_call_operand.hbm [shape: bf16[128,128], index: 2, kind: input, shape index: {}]   ;;  %s707_s3 = inlined_call_operand.vmem [shape: f32[1,128], index: 3, kind: input, shape index: {}]   ;;  %s708_s4 = inlined_call_operand.vmem [shape: f32[1,128], index: 4, kind: input, shape index: {}]   ;;  %s709_s5 = inlined_call_operand.vmem [shape: f32[1,128], index: 5, kind: input, shape index: {}]   ;;  %s710_s6 = inlined_call_operand.hbm [shape: f32[8,128], index: 6, kind: output, shape index: {}]  }
   0x1   :  { %12 = vsyncpa [#allocation8], 0 }
   0x2   :  { %13 = vsyncpa [#allocation6], 0  ;;  %s606_s21 = smov [#allocation7]  }
   0x3   :  { %s29_s22 = sshll.u32 %s606_s21, 4  ;;  %s30_s22 = int_to_ptr.vmem [resolvable:$true] %s29_s22 }
   0x4   :  { %s528_s23 = scalar_lea.vmem %s30_s22, 1024  ;;  %p533_p1 = scmp.lt.s32.totalorder %s30_s22, %s30_s22 }
   0x5   :  { %p529_p0 = scmp.ne.s32.totalorder %s30_s22, %s528_s23  ;;  %p534_p2 = scmp.lt.s32.totalorder %s528_s23, %s528_s23 }
   0x7   :  { %p535_p3 = por %p534_p2, %p533_p1 }
   0x9   :  { %p536_p4 = pnand %p535_p3, %p529_p0 }
   0xb   :  { %539 = shalt.err (!%p536_p4)
}
   0xc   :  { %s607_s24 = smov 64   ;;  %s608_s25 = smov 4  }
   0xd   :  { %35 = dma.hbm_to_vmem [thread:$0]  %s705_s1, 1024, %s30_s22, [#allocation8], %s607_s24, %s607_s24, %s608_s25  }
   0xe   :  { %s609_s28 = smov [#allocation4]   ;;  %s610_s30 = smov [#allocation9]  }
   0xf   :  { %s20_s29 = sshll.u32 %s609_s28, 4  ;;  %s41_s7 = sshll.u32 %s610_s30, 4  ;;  %s21_s29 = int_to_ptr.vmem [resolvable:$true] %s20_s29  ;;  %s42_s7 = int_to_ptr.vmem [resolvable:$true] %s41_s7 }
  0x10   :  { %s548_s8 = scalar_lea.vmem %s21_s29, 128  ;;  %p553_p6 = scmp.lt.s32.totalorder %s21_s29, %s21_s29 }
  0x11   :  { %p549_p5 = scmp.ne.s32.totalorder %s21_s29, %s548_s8  ;;  %p554_p7 = scmp.lt.s32.totalorder %s548_s8, %s548_s8 }
  0x13   :  { %p555_p8 = por %p554_p7, %p553_p6 }
  0x15   :  { %p556_p9 = pnand %p555_p8, %p549_p5 }
  0x17   :  { %559 = shalt.err (!%p556_p9)
}
  0x18   :  { %23 = dma.hbm_to_vmem [thread:$0]  %s704_s0, 128, %s21_s29, [#allocation5]  }
  0x19   :  { %s568_s11 = scalar_lea.vmem %s42_s7, 1024  ;;  %p573_p11 = scmp.lt.s32.totalorder %s42_s7, %s42_s7 }
  0x1a   :  { %p569_p10 = scmp.ne.s32.totalorder %s42_s7, %s568_s11  ;;  %p574_p12 = scmp.lt.s32.totalorder %s568_s11, %s568_s11 }
  0x1c   :  { %p575_p13 = por %p574_p12, %p573_p11 }
  0x1e   :  { %p576_p0 = pnand %p575_p13, %p569_p10 }
  0x20   :  { %579 = shalt.err (!%p576_p0)
}
  0x21   :  { %47 = dma.hbm_to_vmem [thread:$0]  %s706_s2, 1024, %s42_s7, [#allocation8], %s607_s24, %s607_s24, %s608_s25  }
  0x22   :  { %600 = dma.done.wait [#allocation5], 128  }
  0x23   :  { %601 = vsyncadd [#allocation5], 4294967168 }
  0x24   :  { %602 = dma.done.wait [#allocation8], 2048  }
  0x25   :  { %603 = vsyncadd [#allocation8], 4294965248  ;;  %v611_v0 = vmov 0.0   ;;  %vm612_vm0 = vmmov 0   ;;  %v400_v1 = vld [vmem:[#allocation7 + $0x38] sm:$0xff]   ;;  %v399_v3 = vld [vmem:[#allocation7 + $0x30] sm:$0xff]  }
  0x26   :  { %442 = vmatprep.subr.mxu0 %v611_v0  ;;  %477 = vmatprep.subr.mxu1 %v611_v0  ;;  %v407_v2 = vld [vmem:[#allocation9 + $0x38] sm:$0xff]   ;;  %v360_v4 = vunpack.c.l.bf16 %v400_v1  ;;  %v361_v5 = vunpack.c.h.bf16 %v400_v1  ;;  %v406_v8 = vld [vmem:[#allocation9 + $0x30] sm:$0xff]   ;;  %v357_v9 = vunpack.c.h.bf16 %v399_v3  ;;  %v398_v11 = vld [vmem:[#allocation7 + $0x28] sm:$0xff]   ;;  %v356_v13 = vunpack.c.l.bf16 %v399_v3  ;;  %s613_s16 = smov [#allocation10]  }
  0x27   :  { %474 = vmatprep.mubr.msk.f32.mxu0 %vm612_vm0, %v611_v0  ;;  %509 = vmatprep.mubr.msk.f32.mxu1 %vm612_vm0, %v611_v0  ;;  %v392_v6 = vunpack.c.l.bf16 %v407_v2  ;;  %v393_v7 = vunpack.c.h.bf16 %v407_v2  ;;  %v389_v10 = vunpack.c.h.bf16 %v406_v8  ;;  %v405_v12 = vld [vmem:[#allocation9 + $0x28] sm:$0xff]   ;;  %v388_v14 = vunpack.c.l.bf16 %v406_v8  ;;  %v397_v17 = vld [vmem:[#allocation7 + $0x20] sm:$0xff]   ;;  %v396_v23 = vld [vmem:[#allocation7 + $0x18] sm:$0xff]   ;;  %s317_s17 = sshll.u32 %s613_s16, 4  ;;  %s318_s17 = int_to_ptr.vmem [resolvable:$true] %s317_s17 }
  0x28   :  { %443 = vmatpush3.msra.mxu0 %v361_v5  ;;  %v353_v15 = vunpack.c.h.bf16 %v398_v11  ;;  %v385_v16 = vunpack.c.h.bf16 %v405_v12  ;;  %v404_v18 = vld [vmem:[#allocation9 + $0x20] sm:$0xff]   ;;  %v352_v19 = vunpack.c.l.bf16 %v398_v11  ;;  %v384_v20 = vunpack.c.l.bf16 %v405_v12  ;;  %v403_v24 = vld [vmem:[#allocation9 + $0x18] sm:$0xff]   ;;  %v395_v29 = vld [vmem:[#allocation7 + $0x10] sm:$0xff]   ;;  %s580_s18 = scalar_lea.vmem %s318_s17, 128  ;;  %p585_p2 = scmp.lt.s32.totalorder %s318_s17, %s318_s17 }
  0x29   :  { %478 = vmatpush3.msra.mxu1 %v393_v7  ;;  %444 = vmatprep.subr.mxu0 %v611_v0  ;;  %v349_v21 = vunpack.c.h.bf16 %v397_v17  ;;  %v381_v22 = vunpack.c.h.bf16 %v404_v18  ;;  %v348_v25 = vunpack.c.l.bf16 %v397_v17  ;;  %v380_v26 = vunpack.c.l.bf16 %v404_v18  ;;  %v402_v30 = vld [vmem:[#allocation9 + $0x10] sm:$0xff]   ;;  %v394_v35 = vld [vmem:[#allocation7 + $0x8] sm:$0xff]   ;;  %v331_v41 = vld [vmem:[#allocation7] sm:$0xff]   ;;  %p581_p1 = scmp.ne.s32.totalorder %s318_s17, %s580_s18  ;;  %p586_p3 = scmp.lt.s32.totalorder %s580_s18, %s580_s18 }
  0x2a   :  { %479 = vmatprep.subr.mxu1 %v611_v0  ;;  %445 = vmatpush3.msra.mxu0 %v360_v4  ;;  %v345_v27 = vunpack.c.h.bf16 %v396_v23  ;;  %v377_v28 = vunpack.c.h.bf16 %v403_v24  ;;  %v344_v31 = vunpack.c.l.bf16 %v396_v23  ;;  %v376_v32 = vunpack.c.l.bf16 %v403_v24  ;;  %v401_v36 = vld [vmem:[#allocation9 + $0x8] sm:$0xff]   ;;  %v363_v42 = vld [vmem:[#allocation9] sm:$0xff]   ;;  %v69_v47 = vld [vmem:[#allocation4] sm:$0xff] }
  0x2b   :  { %480 = vmatpush3.msra.mxu1 %v392_v6  ;;  %446 = vmatprep.subr.mxu0 %v611_v0  ;;  %v341_v33 = vunpack.c.h.bf16 %v395_v29  ;;  %v373_v34 = vunpack.c.h.bf16 %v402_v30  ;;  %v340_v37 = vunpack.c.l.bf16 %v395_v29  ;;  %v372_v38 = vunpack.c.l.bf16 %v402_v30  ;;  %v327_v48 = vld [vmem:[%s707_s3] ss:$0 sm:$0xff]  ;;  %p587_p4 = por %p586_p3, %p585_p2 }
  0x2c   :  { %481 = vmatprep.subr.mxu1 %v611_v0  ;;  %447 = vmatpush3.msra.mxu0 %v357_v9  ;;  %v337_v39 = vunpack.c.h.bf16 %v394_v35  ;;  %v369_v40 = vunpack.c.h.bf16 %v401_v36  ;;  %v336_v43 = vunpack.c.l.bf16 %v394_v35  ;;  %v368_v44 = vunpack.c.l.bf16 %v401_v36  ;;  %v328_v52 = vld [vmem:[%s708_s4] ss:$0 sm:$0xff] }
  0x2d   :  { %482 = vmatpush3.msra.mxu1 %v389_v10  ;;  %448 = vmatprep.subr.mxu0 %v611_v0  ;;  %v333_v45 = vunpack.c.h.bf16 %v331_v41  ;;  %v365_v46 = vunpack.c.h.bf16 %v363_v42  ;;  %v332_v49 = vunpack.c.l.bf16 %v331_v41  ;;  %v364_v50 = vunpack.c.l.bf16 %v363_v42  ;;  %v329_v58 = vld [vmem:[%s709_s5] ss:$0 sm:$0xff]  ;;  %p588_p5 = pnand %p587_p4, %p581_p1 }
  0x2e   :  { %483 = vmatprep.subr.mxu1 %v611_v0  ;;  %449 = vmatpush3.msra.mxu0 %v356_v13  ;;  %v77_v51 = vmul.f32 %v327_v48, %v69_v47 }
  0x2f   :  { %484 = vmatpush3.msra.mxu1 %v388_v14  ;;  %450 = vmatprep.subr.mxu0 %v611_v0 }
  0x30   :  { %485 = vmatprep.subr.mxu1 %v611_v0  ;;  %451 = vmatpush3.msra.mxu0 %v353_v15 }
  0x31   :  { %486 = vmatpush3.msra.mxu1 %v385_v16  ;;  %452 = vmatprep.subr.mxu0 %v611_v0 }
  0x32   :  { %487 = vmatprep.subr.mxu1 %v611_v0  ;;  %453 = vmatpush3.msra.mxu0 %v352_v19 }
  0x33   :  { %488 = vmatpush3.msra.mxu1 %v384_v20  ;;  %454 = vmatprep.subr.mxu0 %v611_v0 }
  0x34   :  { %489 = vmatprep.subr.mxu1 %v611_v0  ;;  %455 = vmatpush3.msra.mxu0 %v349_v21 }
  0x35   :  { %490 = vmatpush3.msra.mxu1 %v381_v22  ;;  %456 = vmatprep.subr.mxu0 %v611_v0 }
  0x36   :  { %491 = vmatprep.subr.mxu1 %v611_v0  ;;  %457 = vmatpush3.msra.mxu0 %v348_v25 }
  0x37   :  { %492 = vmatpush3.msra.mxu1 %v380_v26  ;;  %458 = vmatprep.subr.mxu0 %v611_v0 }
  0x38   :  { %493 = vmatprep.subr.mxu1 %v611_v0  ;;  %459 = vmatpush3.msra.mxu0 %v345_v27 }
  0x39   :  { %494 = vmatpush3.msra.mxu1 %v377_v28  ;;  %460 = vmatprep.subr.mxu0 %v611_v0 }
  0x3a   :  { %495 = vmatprep.subr.mxu1 %v611_v0  ;;  %461 = vmatpush3.msra.mxu0 %v344_v31 }
  0x3b   :  { %496 = vmatpush3.msra.mxu1 %v376_v32  ;;  %462 = vmatprep.subr.mxu0 %v611_v0 }
  0x3c   :  { %497 = vmatprep.subr.mxu1 %v611_v0  ;;  %463 = vmatpush3.msra.mxu0 %v341_v33 }
  0x3d   :  { %498 = vmatpush3.msra.mxu1 %v373_v34  ;;  %464 = vmatprep.subr.mxu0 %v611_v0 }
  0x3e   :  { %499 = vmatprep.subr.mxu1 %v611_v0  ;;  %465 = vmatpush3.msra.mxu0 %v340_v37 }
  0x3f   :  { %500 = vmatpush3.msra.mxu1 %v372_v38  ;;  %466 = vmatprep.subr.mxu0 %v611_v0 }
  0x40   :  { %501 = vmatprep.subr.mxu1 %v611_v0  ;;  %467 = vmatpush3.msra.mxu0 %v337_v39 }
  0x41   :  { %502 = vmatpush3.msra.mxu1 %v369_v40  ;;  %468 = vmatprep.subr.mxu0 %v611_v0 }
  0x42   :  { %503 = vmatprep.subr.mxu1 %v611_v0  ;;  %469 = vmatpush3.msra.mxu0 %v336_v43 }
  0x43   :  { %504 = vmatpush3.msra.mxu1 %v368_v44  ;;  %470 = vmatprep.subr.mxu0 %v611_v0 }
  0x44   :  { %505 = vmatprep.subr.mxu1 %v611_v0  ;;  %471 = vmatpush3.msra.mxu0 %v333_v45 }
  0x45   :  { %506 = vmatpush3.msra.mxu1 %v365_v46  ;;  %472 = vmatprep.subr.mxu0 %v611_v0 }
  0x46   :  { %507 = vmatprep.subr.mxu1 %v611_v0  ;;  %473 = vmatpush3.msra.mxu0 %v332_v49 }
  0x47   :  { %508 = vmatpush3.msra.mxu1 %v364_v50  ;;  %475 = vmatmul.mubr.f32.vlgmr.msra.gmra.mxu0 %v69_v47 }
  0x48   :  { %510 = vmatmul.mubr.f32.vlgmr.msra.gmra.mxu1 %v77_v51 }
 0x107   :  { %v209_v53 = vpop.f32.mrf.mxu0 }
 0x108   :  { %v282_v54 = vpop.f32.mrf.mxu1 }
 0x109   :  { %v300_v55 = vmul.f32 %v328_v52, %v282_v54  ;;  %v476_v56 = vpop.f32.mrf.mxu0 }
 0x10a   :  { %v511_v57 = vpop.f32.mrf.mxu1 }
 0x10b   :  { %v301_v59 = vadd.f32 %v300_v55, %v209_v53 }
 0x10d   :  { %v309_v60 = vadd.f32 %v329_v58, %v301_v59 }
 0x10f   :  { %310 = vst [vmem:[#allocation10] sm:$0xff] %v309_v60 }
 0x110   :  { %591 = shalt.err (!%p588_p5)
}
 0x111   :  { %320 = dma.vmem_to_hbm [thread:$0]  %s318_s17, 128, %s710_s6, [#allocation6]  }
 0x112   :  { %604 = dma.done.wait [#allocation6], 128  }
 0x113   :  { %605 = vsyncadd [#allocation6], 4294967168 }
 0x114   :  { %324 = vsyncpa [#allocation5], 1 }
 0x115   :  { %325 = vsyncpa [#allocation8], 1 }
 0x116   :  { %326 = vsyncpa [#allocation6], 1 }

</bundles_post_ra>
